<compile_context>
chip_gen: v6e
topology: v6e:2x2x1
jax: 0.10.0
libtpu: 0.0.40
codegen_flags: <defaults>
</compile_context>

<pallas_src>
import jax
import jax.numpy as jnp
from jax.experimental import pallas as pl
from jax.experimental.pallas import tpu as pltpu


def dueling_dqn_kernel(x_ref,
                       w1_ref, b1_ref,
                       w2_ref, b2_ref,
                       wva_ref, bva_ref,
                       whead_ref, bhead_ref,
                       out_ref):
    # Cast x to the MXU compute dtype inside the kernel (x is tiny).
    x = x_ref[...].astype(jnp.bfloat16)

    # f1 + relu  (bf16 inputs, f32 accumulate, f32 elementwise)
    h1 = jnp.dot(x, w1_ref[...],
                 preferred_element_type=jnp.float32) + b1_ref[...]
    h1 = jnp.maximum(h1, 0.0).astype(jnp.bfloat16)

    # f2 + relu
    h2 = jnp.dot(h1, w2_ref[...],
                 preferred_element_type=jnp.float32) + b2_ref[...]
    h2 = jnp.maximum(h2, 0.0).astype(jnp.bfloat16)

    # Fused value/advantage hidden branch: [vh | ah] = h2 @ [wvh | wah]
    va = jnp.dot(h2, wva_ref[...],
                 preferred_element_type=jnp.float32) + bva_ref[...]
    va = jnp.maximum(va, 0.0).astype(jnp.bfloat16)

    # Head with the dueling combine folded into the weights at pack time:
    #   head = adv - mean(adv) + val   (no in-kernel epilogue needed)
    head = jnp.dot(va, whead_ref[...],
                   preferred_element_type=jnp.float32) + bhead_ref[...]
    out_ref[...] = head.astype(out_ref.dtype)


def pack_params(params, compute_dtype=jnp.bfloat16):
    """Fuse branch weights, fold the dueling combine into the head, cast to bf16.

    Weight convention: (in_features, out_features), i.e. transposed vs PyTorch,
    so every layer is x @ W + b. Biases are (1, out_features) f32.
    """
    Hv = params["wvh"].shape[1]          # 128 (value-hidden width)
    A = params["wadv"].shape[1]          # action_dim

    # [wvh | wah] : (256, 256),  [bvh | bah] : (1, 256)
    wva = jnp.concatenate([params["wvh"], params["wah"]], axis=1)
    bva = jnp.concatenate([params["bvh"], params["bah"]], axis=1)

    # Fold adv - mean(adv) + val into a single (256, A) head weight:
    #   rows 0:Hv   (vh lanes) -> wval broadcast across all A columns (+val)
    #   rows Hv:    (ah lanes) -> wadv @ C, with C = I_A - (1/A) 11^T
    # and bhead = badv @ C + bval (broadcast).
    C = jnp.eye(A, dtype=jnp.float32) - jnp.full((A, A), 1.0 / A, jnp.float32)
    whead = jnp.concatenate(
        [jnp.broadcast_to(params["wval"], (Hv, A)),       # wval is (Hv, 1)
         params["wadv"] @ C],
        axis=0)                                           # (256, A)
    bhead = params["badv"] @ C + params["bval"]           # (1, A)

    return dict(
        w1=params["w1"].astype(compute_dtype),
        b1=params["b1"].astype(jnp.float32),
        w2=params["w2"].astype(compute_dtype),
        b2=params["b2"].astype(jnp.float32),
        wva=wva.astype(compute_dtype),
        bva=bva.astype(jnp.float32),
        whead=whead.astype(compute_dtype),
        bhead=bhead.astype(jnp.float32),
    )


def dueling_dqn_forward(x, packed, *, batch_tile=256):
    """x: (B, state_dim) f32; packed: output of pack_params."""
    B, S = x.shape
    A = packed["bhead"].shape[1]
    H1 = packed["w1"].shape[1]
    H2 = packed["w2"].shape[1]
    HVA = packed["wva"].shape[1]

    operands = (
        x,                                   # cast to bf16 inside the kernel
        packed["w1"], packed["b1"],
        packed["w2"], packed["b2"],
        packed["wva"], packed["bva"],
        packed["whead"], packed["bhead"],
    )

    flops = 2 * B * (S * H1 + H1 * H2 + H2 * HVA + HVA * A)
    bytes_accessed = (sum(int(o.size) * o.dtype.itemsize for o in operands)
                      + B * A * 4)
    cost = pl.CostEstimate(flops=flops, transcendentals=0,
                           bytes_accessed=bytes_accessed)
    out_shape = jax.ShapeDtypeStruct((B, A), jnp.float32)

    gridded = (B > batch_tile) and (B % batch_tile == 0)
    if not gridded:
        # Tiny / inference batch: single un-gridded VMEM block (no per-step
        # grid scaffolding; everything fits comfortably in VMEM).
        return pl.pallas_call(
            dueling_dqn_kernel,
            out_shape=out_shape,
            in_specs=[pl.BlockSpec(memory_space=pltpu.MemorySpace.VMEM)
                      for _ in operands],
            out_specs=pl.BlockSpec(memory_space=pltpu.MemorySpace.VMEM),
            cost_estimate=cost,
        )(*operands)

    # Training-style batch: grid over batch tiles. Weights/biases use constant
    # index_maps so they stay VMEM-resident across tiles (DMA'd once); the
    # batch axis is "parallel" so v7x shards tiles across its 2 TensorCores.
    def _x_map(i):
        return (i, 0)

    def _const_map(i):
        return (0, 0)

    in_specs = [pl.BlockSpec((batch_tile, S), _x_map)]
    for name in ("w1", "b1", "w2", "b2", "wva", "bva", "whead", "bhead"):
        in_specs.append(pl.BlockSpec(packed[name].shape, _const_map))

    return pl.pallas_call(
        dueling_dqn_kernel,
        out_shape=out_shape,
        grid=(B // batch_tile,),
        in_specs=in_specs,
        out_specs=pl.BlockSpec((batch_tile, A), _x_map),
        compiler_params=pltpu.CompilerParams(
            dimension_semantics=("parallel",)),
        cost_estimate=cost,
    )(*operands)


def init_params(key, state_dim, action_dim):
    """Deterministic init mimicking PyTorch Linear default (uniform +/- 1/sqrt(fan_in))."""
    dims = [
        ("w1", "b1", state_dim, 512),
        ("w2", "b2", 512, 256),
        ("wvh", "bvh", 256, 128),
        ("wah", "bah", 256, 128),
        ("wval", "bval", 128, 1),
        ("wadv", "badv", 128, action_dim),
    ]
    params = {}
    for wname, bname, fan_in, fan_out in dims:
        key, kw, kb = jax.random.split(key, 3)
        bound = 1.0 / jnp.sqrt(jnp.float32(fan_in))
        params[wname] = jax.random.uniform(
            kw, (fan_in, fan_out), jnp.float32, -bound, bound)
        params[bname] = jax.random.uniform(
            kb, (1, fan_out), jnp.float32, -bound, bound)
    return params


def reference_forward_bf16(x, params):
    """Pure-JAX reference using the same bf16-weights / f32-accumulate recipe."""
    dt = jnp.bfloat16

    def lin(h, w, b):
        return jnp.dot(h.astype(dt), w.astype(dt),
                       preferred_element_type=jnp.float32) + b

    h1 = jnp.maximum(lin(x, params["w1"], params["b1"]), 0.0)
    h2 = jnp.maximum(lin(h1, params["w2"], params["b2"]), 0.0)
    vh = jnp.maximum(lin(h2, params["wvh"], params["bvh"]), 0.0)
    ah = jnp.maximum(lin(h2, params["wah"], params["bah"]), 0.0)
    val = lin(vh, params["wval"], params["bval"])
    adv = lin(ah, params["wadv"], params["badv"])
    return adv + val - jnp.mean(adv, axis=1, keepdims=True)


if __name__ == "__main__":
    STATE_DIM, ACTION_DIM = 32, 8

    key = jax.random.PRNGKey(0)
    key, kx_small, kx_big = jax.random.split(key, 3)
    params = init_params(key, STATE_DIM, ACTION_DIM)
    packed = pack_params(params)

    # Small (per-env-step) batch: single un-gridded block.
    x_small = jax.random.normal(kx_small, (8, STATE_DIM), jnp.float32)
    out_small = jax.block_until_ready(dueling_dqn_forward(x_small, packed))
    ref_small = reference_forward_bf16(x_small, params)
    assert out_small.shape == (8, ACTION_DIM)
    assert jnp.allclose(out_small, ref_small, atol=2e-2, rtol=2e-2), \
        "small-batch mismatch vs JAX reference"

    # Larger (training minibatch) batch: gridded over batch, weights resident.
    x_big = jax.random.normal(kx_big, (512, STATE_DIM), jnp.float32)
    out_big = jax.block_until_ready(
        dueling_dqn_forward(x_big, packed, batch_tile=256))
    ref_big = reference_forward_bf16(x_big, params)
    assert out_big.shape == (512, ACTION_DIM)
    assert jnp.allclose(out_big, ref_big, atol=2e-2, rtol=2e-2), \
        "large-batch mismatch vs JAX reference"

    print("KERNEL_OK")
</pallas_src>

<mosaic_0001>
module attributes {stable_mosaic.version = 11 : i64} {
  func.func @dueling_dqn_kernel(%arg0: memref<8x32xf32, #tpu.memory_space<vmem>>, %arg1: memref<32x512xbf16, #tpu.memory_space<vmem>>, %arg2: memref<1x512xf32, #tpu.memory_space<vmem>>, %arg3: memref<512x256xbf16, #tpu.memory_space<vmem>>, %arg4: memref<1x256xf32, #tpu.memory_space<vmem>>, %arg5: memref<256x256xbf16, #tpu.memory_space<vmem>>, %arg6: memref<1x256xf32, #tpu.memory_space<vmem>>, %arg7: memref<256x8xbf16, #tpu.memory_space<vmem>>, %arg8: memref<1x8xf32, #tpu.memory_space<vmem>>, %arg9: memref<8x8xf32, #tpu.memory_space<vmem>>) attributes {dimension_semantics = [], scalar_prefetch = 0 : i64, scratch_operands = 0 : i64, tpu.core_type = #tpu.core_type<tc>} {
    %c0 = arith.constant 0 : index
    %c0_0 = arith.constant 0 : index
    %0 = vector.load %arg0[%c0, %c0_0] : memref<8x32xf32, #tpu.memory_space<vmem>>, vector<8x32xf32>
    %1 = arith.truncf %0 : vector<8x32xf32> to vector<8x32xbf16>
    %c0_1 = arith.constant 0 : index
    %c0_2 = arith.constant 0 : index
    %2 = vector.load %arg1[%c0_1, %c0_2] : memref<32x512xbf16, #tpu.memory_space<vmem>>, vector<32x512xbf16>
    %cst = arith.constant dense<0.000000e+00> : vector<8x512xf32>
    %3 = tpu.matmul %1, %2, %cst {dimension_numbers = #tpu.dot_dimension_numbers<[1], [0], [0], [1], [0, 0, 1, 1], [], []>} : vector<8x32xbf16>, vector<32x512xbf16>, vector<8x512xf32> -> vector<8x512xf32>
    %c0_3 = arith.constant 0 : index
    %c0_4 = arith.constant 0 : index
    %4 = vector.load %arg2[%c0_3, %c0_4] : memref<1x512xf32, #tpu.memory_space<vmem>>, vector<1x512xf32>
    %5 = vector.broadcast %4 : vector<1x512xf32> to vector<8x512xf32>
    %6 = arith.addf %3, %5 : vector<8x512xf32>
    %cst_5 = arith.constant 0.000000e+00 : f32
    %7 = vector.broadcast %cst_5 : f32 to vector<8x512xf32>
    %8 = arith.maximumf %6, %7 : vector<8x512xf32>
    %9 = arith.truncf %8 : vector<8x512xf32> to vector<8x512xbf16>
    %c0_6 = arith.constant 0 : index
    %c0_7 = arith.constant 0 : index
    %10 = vector.load %arg3[%c0_6, %c0_7] : memref<512x256xbf16, #tpu.memory_space<vmem>>, vector<512x256xbf16>
    %cst_8 = arith.constant dense<0.000000e+00> : vector<8x256xf32>
    %11 = tpu.matmul %9, %10, %cst_8 {dimension_numbers = #tpu.dot_dimension_numbers<[1], [0], [0], [1], [0, 0, 1, 1], [], []>} : vector<8x512xbf16>, vector<512x256xbf16>, vector<8x256xf32> -> vector<8x256xf32>
    %c0_9 = arith.constant 0 : index
    %c0_10 = arith.constant 0 : index
    %12 = vector.load %arg4[%c0_9, %c0_10] : memref<1x256xf32, #tpu.memory_space<vmem>>, vector<1x256xf32>
    %13 = vector.broadcast %12 : vector<1x256xf32> to vector<8x256xf32>
    %14 = arith.addf %11, %13 : vector<8x256xf32>
    %cst_11 = arith.constant 0.000000e+00 : f32
    %15 = vector.broadcast %cst_11 : f32 to vector<8x256xf32>
    %16 = arith.maximumf %14, %15 : vector<8x256xf32>
    %17 = arith.truncf %16 : vector<8x256xf32> to vector<8x256xbf16>
    %c0_12 = arith.constant 0 : index
    %c0_13 = arith.constant 0 : index
    %18 = vector.load %arg5[%c0_12, %c0_13] : memref<256x256xbf16, #tpu.memory_space<vmem>>, vector<256x256xbf16>
    %cst_14 = arith.constant dense<0.000000e+00> : vector<8x256xf32>
    %19 = tpu.matmul %17, %18, %cst_14 {dimension_numbers = #tpu.dot_dimension_numbers<[1], [0], [0], [1], [0, 0, 1, 1], [], []>} : vector<8x256xbf16>, vector<256x256xbf16>, vector<8x256xf32> -> vector<8x256xf32>
    %c0_15 = arith.constant 0 : index
    %c0_16 = arith.constant 0 : index
    %20 = vector.load %arg6[%c0_15, %c0_16] : memref<1x256xf32, #tpu.memory_space<vmem>>, vector<1x256xf32>
    %21 = vector.broadcast %20 : vector<1x256xf32> to vector<8x256xf32>
    %22 = arith.addf %19, %21 : vector<8x256xf32>
    %cst_17 = arith.constant 0.000000e+00 : f32
    %23 = vector.broadcast %cst_17 : f32 to vector<8x256xf32>
    %24 = arith.maximumf %22, %23 : vector<8x256xf32>
    %25 = arith.truncf %24 : vector<8x256xf32> to vector<8x256xbf16>
    %c0_18 = arith.constant 0 : index
    %c0_19 = arith.constant 0 : index
    %26 = vector.load %arg7[%c0_18, %c0_19] : memref<256x8xbf16, #tpu.memory_space<vmem>>, vector<256x8xbf16>
    %cst_20 = arith.constant dense<0.000000e+00> : vector<8x8xf32>
    %27 = tpu.matmul %25, %26, %cst_20 {dimension_numbers = #tpu.dot_dimension_numbers<[1], [0], [0], [1], [0, 0, 1, 1], [], []>} : vector<8x256xbf16>, vector<256x8xbf16>, vector<8x8xf32> -> vector<8x8xf32>
    %c0_21 = arith.constant 0 : index
    %c0_22 = arith.constant 0 : index
    %28 = vector.load %arg8[%c0_21, %c0_22] : memref<1x8xf32, #tpu.memory_space<vmem>>, vector<1x8xf32>
    %29 = vector.broadcast %28 : vector<1x8xf32> to vector<8x8xf32>
    %30 = arith.addf %27, %29 : vector<8x8xf32>
    %c0_23 = arith.constant 0 : index
    %c0_24 = arith.constant 0 : index
    %31 = vector.load %arg9[%c0_23, %c0_24] : memref<8x8xf32, #tpu.memory_space<vmem>>, vector<8x8xf32>
    tpu.vector_store %arg9[%c0_23, %c0_24], %30 {strides = array<i32>} : memref<8x8xf32, #tpu.memory_space<vmem>>, vector<8x8xf32>,
    return
  }
}

</mosaic_0001>

<bundles_post_ra>
// kernel: tpu_custom_call.1
= control target key start
LH: loop header
LB: loop body
LE: loop exit
PB: predicated region body
PF: predicated region fallthrough
CT: control target
= control target key end

     0   :  { %14 = vsyncpa [#allocation3], 0  ;;  %s1705_s0 = inlined_call_operand.vmem [shape: f32[8,32], index: 0, kind: input, shape index: {}]   ;;  %s1706_s1 = inlined_call_operand.vmem [shape: bf16[32,512], index: 1, kind: input, shape index: {}]   ;;  %s1707_s2 = inlined_call_operand.vmem [shape: f32[1,512], index: 2, kind: input, shape index: {}]   ;;  %s1708_s3 = inlined_call_operand.hbm [shape: bf16[512,256], index: 3, kind: input, shape index: {}]   ;;  %s1709_s4 = inlined_call_operand.vmem [shape: f32[1,256], index: 4, kind: input, shape index: {}]   ;;  %s1710_s5 = inlined_call_operand.hbm [shape: bf16[256,256], index: 5, kind: input, shape index: {}]   ;;  %s1711_s6 = inlined_call_operand.vmem [shape: f32[1,256], index: 6, kind: input, shape index: {}]   ;;  %s1712_s7 = inlined_call_operand.vmem [shape: bf16[256,8], index: 7, kind: input, shape index: {}]   ;;  %s1713_s8 = inlined_call_operand.vmem [shape: f32[1,8], index: 8, kind: input, shape index: {}]   ;;  %s1714_s9 = inlined_call_operand.hbm [shape: f32[8,8], index: 9, kind: output, shape index: {}]  }
   0x1   :  { %15 = vsyncpa [#allocation6], 0 }
   0x2   :  { %16 = vsyncpa [#allocation4], 0  ;;  %s1541_s30 = smov [#allocation2]  }
   0x3   :  { %s28_s10 = sshll.u32 %s1541_s30, 4  ;;  %s29_s10 = int_to_ptr.vmem [resolvable:$true] %s28_s10 }
   0x4   :  { %s1483_s11 = scalar_lea.vmem %s29_s10, 8192  ;;  %p1488_p1 = scmp.lt.s32.totalorder %s29_s10, %s29_s10 }
   0x5   :  { %p1484_p0 = scmp.ne.s32.totalorder %s29_s10, %s1483_s11  ;;  %p1489_p2 = scmp.lt.s32.totalorder %s1483_s11, %s1483_s11 }
   0x7   :  { %p1490_p3 = por %p1489_p2, %p1488_p1 }
   0x9   :  { %p1491_p4 = pnand %p1490_p3, %p1484_p0 }
   0xb   :  { %1494 = shalt.err (!%p1491_p4)
}
   0xc   :  { %s1542_s12 = smov 128   ;;  %s1543_s13 = smov 8  }
   0xd   :  { %34 = dma.hbm_to_vmem [thread:$0]  %s1708_s3, 8192, %s29_s10, [#allocation3], %s1542_s12, %s1542_s12, %s1543_s13  }
   0xe   :  { %s1544_s16 = smov [#allocation5]  }
   0xf   :  { %s42_s17 = sshll.u32 %s1544_s16, 4  ;;  %s43_s17 = int_to_ptr.vmem [resolvable:$true] %s42_s17 }
  0x10   :  { %s1503_s18 = scalar_lea.vmem %s43_s17, 4096  ;;  %p1508_p6 = scmp.lt.s32.totalorder %s43_s17, %s43_s17 }
  0x11   :  { %p1504_p5 = scmp.ne.s32.totalorder %s43_s17, %s1503_s18  ;;  %p1509_p7 = scmp.lt.s32.totalorder %s1503_s18, %s1503_s18 }
  0x13   :  { %p1510_p8 = por %p1509_p7, %p1508_p6 }
  0x15   :  { %p1511_p9 = pnand %p1510_p8, %p1504_p5 }
  0x17   :  { %1514 = shalt.err (!%p1511_p9)
}
  0x18   :  { %48 = dma.hbm_to_vmem [thread:$0]  %s1710_s5, 4096, %s43_s17, [#allocation6], %s1542_s12, %s1542_s12, %s1543_s13  }
  0x19   :  { %1535 = dma.done.wait [#allocation3], 8192  }
  0x1a   :  { %1536 = vsyncadd [#allocation3], 4294959104 }
  0x1b   :  { %1537 = dma.done.wait [#allocation6], 4096  }
  0x1c   :  { %1538 = vsyncadd [#allocation6], 4294963200  ;;  %v1545_v0 = vmov 0   ;;  %v1303_v1 = vld [vmem:[%s1706_s1 + $0x24] ss:$16 sps:$4 sm:$0xff]   ;;  %vm134_vm0 = vcmask 261120  }
  0x1d   :  { %170 = vmatprep.mubr.bf16.mxu1 %v1545_v0  ;;  %v1305_v2 = vld [vmem:[%s1706_s1 + $0x20] ss:$16 sps:$4 sm:$0xff]   ;;  %150 = vmatprep.subr.bf16.mxu1 %v1303_v1  ;;  %v1306_v3 = vld [vmem:[%s1706_s1 + $0x4] ss:$16 sps:$4 sm:$0xff]   ;;  %v1311_v6 = vld [vmem:[%s1706_s1 + $0x2c] ss:$16 sps:$4 sm:$0xff]  }
  0x1e   :  { %v1308_v4 = vld [vmem:[%s1706_s1] ss:$16 sps:$4 sm:$0xff]   ;;  %151 = vmatpush1.bf16.msra.mxu1 %v1305_v2  ;;  %v1309_v7 = vld [vmem:[%s1706_s1 + $0x28] ss:$16 sps:$4 sm:$0xff]   ;;  %v1315_v9 = vld [vmem:[#allocation2 + $0x74] ss:$8 sps:$4 sm:$0xff]  }
  0x1f   :  { %v62_v5 = vld [vmem:[%s1705_s0] sm:$0xff]  ;;  %152 = vmatprep.subr.bf16.mxu1 %v1306_v3  ;;  %v1317_v10 = vld [vmem:[#allocation2 + $0x70] ss:$8 sps:$4 sm:$0xff]   ;;  %v1314_v12 = vld [vmem:[%s1706_s1 + $0xc] ss:$16 sps:$4 sm:$0xff]   ;;  %624 = vmatprep.subr.bf16.mxu0 %v1315_v9  ;;  %vm1134_vm1 = vcmask 64512  }
  0x20   :  { %v63_v8 = vpack.c.bf16 %v62_v5, %v62_v5  ;;  %v1318_v11 = vld [vmem:[#allocation2 + $0x64] ss:$8 sps:$4 sm:$0xff]   ;;  %625 = vmatpush1.bf16.msra.mxu0 %v1317_v10  ;;  %v1320_v13 = vld [vmem:[#allocation2 + $0x60] ss:$8 sps:$4 sm:$0xff]   ;;  %v1321_v14 = vld [vmem:[#allocation2 + $0x54] ss:$8 sps:$4 sm:$0xff]  }
  0x21   :  { %626 = vmatprep.subr.bf16.mxu0 %v1318_v11  ;;  %v1312_v15 = vld [vmem:[%s1706_s1 + $0x8] ss:$16 sps:$4 sm:$0xff]   ;;  %v1325_v16 = vld [vmem:[#allocation2 + $0x174] ss:$8 sps:$4 sm:$0xff]   ;;  %v1327_v18 = vld [vmem:[#allocation2 + $0x44] ss:$8 sps:$4 sm:$0xff]  }
  0x22   :  { %153 = vmatpush1.bf16.msra.mxu1 %v1308_v4  ;;  %v1326_v17 = vld [vmem:[#allocation2 + $0x50] ss:$8 sps:$4 sm:$0xff]   ;;  %v1331_v20 = vld [vmem:[#allocation2 + $0x164] ss:$8 sps:$4 sm:$0xff]   ;;  %v1332_v21 = vld [vmem:[#allocation2 + $0x40] ss:$8 sps:$4 sm:$0xff]  }
  0x23   :  { %191 = vmatprep.subr.bf16.mxu1 %v1311_v6  ;;  %v1323_v19 = vld [vmem:[#allocation2 + $0x170] ss:$8 sps:$4 sm:$0xff]   ;;  %v1333_v22 = vld [vmem:[#allocation2 + $0x34] ss:$8 sps:$4 sm:$0xff]   ;;  %v1329_v23 = vld [vmem:[#allocation2 + $0x160] ss:$8 sps:$4 sm:$0xff]  }
  0x24   :  { %627 = vmatpush1.bf16.msra.mxu0 %v1320_v13  ;;  %v1337_v24 = vld [vmem:[#allocation2 + $0x154] ss:$8 sps:$4 sm:$0xff]   ;;  %v1338_v25 = vld [vmem:[#allocation2 + $0x30] ss:$8 sps:$4 sm:$0xff]   ;;  %v1339_v26 = vld [vmem:[#allocation2 + $0x24] ss:$8 sps:$4 sm:$0xff]  }
  0x25   :  { %1160 = vmatmul.mubr.msk.bf16.vlgmr.msra.gmra.mxu1 %vm134_vm0, %v63_v8  ;;  %628 = vmatprep.subr.bf16.mxu0 %v1321_v14  ;;  %v1335_v27 = vld [vmem:[#allocation2 + $0x150] ss:$8 sps:$4 sm:$0xff]   ;;  %v1343_v28 = vld [vmem:[#allocation2 + $0x144] ss:$8 sps:$4 sm:$0xff]   ;;  %v1344_v29 = vld [vmem:[#allocation2 + $0x20] ss:$8 sps:$4 sm:$0xff]  }
  0x26   :  { %192 = vmatpush1.bf16.msra.mxu1 %v1309_v7  ;;  %211 = vmatprep.mubr.bf16.mxu1 %v1545_v0  ;;  %v1345_v30 = vld [vmem:[#allocation2 + $0x14] ss:$8 sps:$4 sm:$0xff]   ;;  %v1341_v31 = vld [vmem:[#allocation2 + $0x140] ss:$8 sps:$4 sm:$0xff]   ;;  %v1350_v33 = vld [vmem:[#allocation2 + $0x10] ss:$8 sps:$4 sm:$0xff]  }
  0x27   :  { %193 = vmatprep.subr.bf16.mxu1 %v1314_v12  ;;  %v1349_v32 = vld [vmem:[#allocation2 + $0x134] ss:$8 sps:$4 sm:$0xff]   ;;  %v1351_v34 = vld [vmem:[#allocation2 + $0x4] ss:$8 sps:$4 sm:$0xff]   ;;  %v1347_v35 = vld [vmem:[#allocation2 + $0x130] ss:$8 sps:$4 sm:$0xff]   ;;  %v74_v12 = vlaneseq }
  0x28   :  { %629 = vmatpush1.bf16.msra.mxu0 %v1326_v17  ;;  %v1355_v36 = vld [vmem:[#allocation2 + $0x124] ss:$8 sps:$4 sm:$0xff]   ;;  %v1356_v37 = vld [vmem:[#allocation2] ss:$8 sps:$4 sm:$0xff]   ;;  %v1357_v38 = vld [vmem:[#allocation2 + $0xf4] ss:$8 sps:$4 sm:$0xff]  }
  0x29   :  { %630 = vmatprep.subr.bf16.mxu0 %v1327_v18  ;;  %v1353_v39 = vld [vmem:[#allocation2 + $0x120] ss:$8 sps:$4 sm:$0xff]   ;;  %v1361_v40 = vld [vmem:[#allocation2 + $0x114] ss:$8 sps:$4 sm:$0xff]   ;;  %v1362_v41 = vld [vmem:[#allocation2 + $0xf0] ss:$8 sps:$4 sm:$0xff]  }
  0x2a   :  { %194 = vmatpush1.bf16.msra.mxu1 %v1312_v15  ;;  %v1363_v42 = vld [vmem:[#allocation2 + $0xe4] ss:$8 sps:$4 sm:$0xff]   ;;  %v1359_v43 = vld [vmem:[#allocation2 + $0x110] ss:$8 sps:$4 sm:$0xff]   ;;  %v1368_v45 = vld [vmem:[#allocation2 + $0xe0] ss:$8 sps:$4 sm:$0xff]  }
  0x2b   :  { %665 = vmatprep.subr.bf16.mxu1 %v1325_v16  ;;  %v1367_v44 = vld [vmem:[#allocation2 + $0x104] ss:$8 sps:$4 sm:$0xff]   ;;  %v1369_v46 = vld [vmem:[#allocation2 + $0xd4] ss:$8 sps:$4 sm:$0xff]   ;;  %v1365_v47 = vld [vmem:[#allocation2 + $0x100] ss:$8 sps:$4 sm:$0xff]  }
  0x2c   :  { %631 = vmatpush1.bf16.msra.mxu0 %v1332_v21  ;;  %v1373_v48 = vld [vmem:[#allocation2 + $0x1f4] ss:$8 sps:$4 sm:$0xff]   ;;  %v1374_v49 = vld [vmem:[#allocation2 + $0xd0] ss:$8 sps:$4 sm:$0xff]   ;;  %v1375_v50 = vld [vmem:[#allocation2 + $0xc4] ss:$8 sps:$4 sm:$0xff]  }
  0x2d   :  { %1161 = vmatmul.mubr.msk.bf16.vlgmr.msra.gmra.mxu1 %vm134_vm0, %v63_v8  ;;  %632 = vmatprep.subr.bf16.mxu0 %v1333_v22  ;;  %v1371_v51 = vld [vmem:[#allocation2 + $0x1f0] ss:$8 sps:$4 sm:$0xff]   ;;  %v1379_v52 = vld [vmem:[#allocation2 + $0x1e4] ss:$8 sps:$4 sm:$0xff]   ;;  %v1380_v53 = vld [vmem:[#allocation2 + $0xc0] ss:$8 sps:$4 sm:$0xff]  }
  0x2e   :  { %666 = vmatpush1.bf16.msra.mxu1 %v1323_v19  ;;  %v1381_v54 = vld [vmem:[#allocation2 + $0xb4] ss:$8 sps:$4 sm:$0xff]   ;;  %v1377_v55 = vld [vmem:[#allocation2 + $0x1e0] ss:$8 sps:$4 sm:$0xff]   ;;  %v1386_v57 = vld [vmem:[#allocation2 + $0xb0] ss:$8 sps:$4 sm:$0xff]  }
  0x2f   :  { %667 = vmatprep.subr.bf16.mxu1 %v1331_v20  ;;  %v1385_v56 = vld [vmem:[#allocation2 + $0x1d4] ss:$8 sps:$4 sm:$0xff]   ;;  %v1387_v58 = vld [vmem:[#allocation2 + $0xa4] ss:$8 sps:$4 sm:$0xff]   ;;  %v1383_v59 = vld [vmem:[#allocation2 + $0x1d0] ss:$8 sps:$4 sm:$0xff]  }
  0x30   :  { %633 = vmatpush1.bf16.msra.mxu0 %v1338_v25  ;;  %v1391_v60 = vld [vmem:[#allocation2 + $0x1c4] ss:$8 sps:$4 sm:$0xff]   ;;  %v1392_v61 = vld [vmem:[#allocation2 + $0xa0] ss:$8 sps:$4 sm:$0xff]   ;;  %v1393_v63 = vld [vmem:[#allocation2 + $0x94] ss:$8 sps:$4 sm:$0xff]  }
  0x31   :  { %634 = vmatprep.subr.bf16.mxu0 %v1339_v26  ;;  %v1389_v62 = vld [vmem:[#allocation2 + $0x1c0] ss:$8 sps:$4 sm:$0xff]   ;;  %v1397_v0 = vld [vmem:[#allocation2 + $0x1b4] ss:$8 sps:$4 sm:$0xff]   ;;  %v1395_v1 = vld [vmem:[#allocation2 + $0x1b0] ss:$8 sps:$4 sm:$0xff]  }
  0x32   :  { %668 = vmatpush1.bf16.msra.mxu1 %v1329_v23  ;;  %v1398_v2 = vld [vmem:[#allocation2 + $0x90] ss:$8 sps:$4 sm:$0xff]   ;;  %v1399_v3 = vld [vmem:[#allocation2 + $0x84] ss:$8 sps:$4 sm:$0xff]   ;;  %v1401_v5 = vld [vmem:[#allocation2 + $0x1a0] ss:$8 sps:$4 sm:$0xff]  }
  0x33   :  { %669 = vmatprep.subr.bf16.mxu1 %v1337_v24  ;;  %v1403_v4 = vld [vmem:[#allocation2 + $0x1a4] ss:$8 sps:$4 sm:$0xff]   ;;  %v1404_v6 = vld [vmem:[#allocation2 + $0x80] ss:$8 sps:$4 sm:$0xff]   ;;  %v1407_v7 = vld [vmem:[#allocation2 + $0x194] ss:$8 sps:$4 sm:$0xff]  }
  0x34   :  { %635 = vmatpush1.bf16.msra.mxu0 %v1344_v29  ;;  %v1405_v8 = vld [vmem:[#allocation2 + $0x190] ss:$8 sps:$4 sm:$0xff]   ;;  %v1410_v9 = vld [vmem:[#allocation2 + $0x184] ss:$8 sps:$4 sm:$0xff]   ;;  %v1408_v10 = vld [vmem:[#allocation2 + $0x180] ss:$8 sps:$4 sm:$0xff]  }
  0x35   :  { %636 = vmatprep.subr.bf16.mxu0 %v1345_v30  ;;  %v1413_v11 = vld [vmem:[#allocation5 + $0x74] ss:$8 sps:$4 sm:$0xff]   ;;  %v75_v13 = vshrl.u32 %v74_v12, 7  ;;  %v72_v15 = vld [vmem:[%s1707_s2] sm:$0xf] }
  0x36   :  { %670 = vmatpush1.bf16.msra.mxu1 %v1335_v27  ;;  %v1461_v12 = vld [vmem:[%s1712_s7 + $0x70] sm:$0xff]  }
  0x37   :  { %671 = vmatprep.subr.bf16.mxu1 %v1343_v28  ;;  %v1632_v14 = vsub.s32 0, %v75_v13  ;;  %v1637_v16 = vsub.s32 1, %v75_v13  ;;  %v84_v21 = vsub.s32 2, %v75_v13  ;;  %v88_v24 = vsub.s32 3, %v75_v13  ;;  %v1462_v13 = vld [vmem:[%s1712_s7 + $0x30] sm:$0xff]  }
  0x38   :  { %637 = vmatpush1.bf16.msra.mxu0 %v1350_v33 }
  0x39   :  { %638 = vmatprep.subr.bf16.mxu0 %v1351_v34  ;;  %v77_v17 = vrot.slane %v72_v15, %v1632_v14  ;;  %v81_v18 = vrot.slane %v72_v15, %v1637_v16  ;;  %v85_v27 = vrot.slane %v72_v15, %v84_v21  ;;  %v1468_v21 = vld [vmem:[%s1712_s7 + $0x18] sm:$0xff]  }
  0x3a   :  { %672 = vmatpush1.bf16.msra.mxu1 %v1341_v31  ;;  %v89_v31 = vrot.slane %v72_v15, %v88_v24  ;;  %v1463_v15 = vld [vmem:[%s1712_s7 + $0x68] sm:$0xff]   ;;  %v292_v24 = vld [vmem:[%s1709_s4] sm:$0x3] }
  0x3b   :  { %673 = vmatprep.subr.bf16.mxu1 %v1349_v32  ;;  %v1411_v32 = vld [vmem:[#allocation5 + $0x70] ss:$8 sps:$4 sm:$0xff]  }
  0x3c   :  { %639 = vmatpush1.bf16.msra.mxu0 %v1356_v37 }
  0x3d   :  { %640 = vmatprep.subr.bf16.mxu0 %v1357_v38 }
  0x3e   :  { %674 = vmatpush1.bf16.msra.mxu1 %v1347_v35  ;;  %v1416_v35 = vld [vmem:[#allocation5 + $0x64] ss:$8 sps:$4 sm:$0xff]  }
  0x3f   :  { %675 = vmatprep.subr.bf16.mxu1 %v1355_v36 }
  0x40   :  { %641 = vmatpush2.bf16.msra.mxu0 %v1362_v41 }
  0x41   :  { %642 = vmatprep.subr.bf16.mxu0 %v1363_v42  ;;  %v1419_v42 = vld [vmem:[#allocation5 + $0x54] ss:$8 sps:$4 sm:$0xff]  }
  0x42   :  { %676 = vmatpush1.bf16.msra.mxu1 %v1353_v39  ;;  %v1414_v39 = vld [vmem:[#allocation5 + $0x60] ss:$8 sps:$4 sm:$0xff]  }
  0x43   :  { %677 = vmatprep.subr.bf16.mxu1 %v1361_v40 }
  0x44   :  { %643 = vmatpush2.bf16.msra.mxu0 %v1368_v45 }
  0x45   :  { %644 = vmatprep.subr.bf16.mxu0 %v1369_v46  ;;  %v1417_v46 = vld [vmem:[#allocation5 + $0x50] ss:$8 sps:$4 sm:$0xff]  }
  0x46   :  { %678 = vmatpush1.bf16.msra.mxu1 %v1359_v43 }
  0x47   :  { %679 = vmatprep.subr.bf16.mxu1 %v1367_v44 }
  0x48   :  { %645 = vmatpush2.bf16.msra.mxu0 %v1374_v49  ;;  %v1420_v49 = vld [vmem:[#allocation5 + $0x40] ss:$8 sps:$4 sm:$0xff]  }
  0x49   :  { %646 = vmatprep.subr.bf16.mxu0 %v1375_v50  ;;  %v1425_v50 = vld [vmem:[#allocation5 + $0x34] ss:$8 sps:$4 sm:$0xff]  }
  0x4a   :  { %680 = vmatpush1.bf16.msra.mxu1 %v1365_v47 }
  0x4b   :  { %681 = vmatprep.subr.bf16.mxu1 %v1373_v48  ;;  %v1422_v48 = vld [vmem:[#allocation5 + $0x44] ss:$8 sps:$4 sm:$0xff]  }
  0x4c   :  { %647 = vmatpush2.bf16.msra.mxu0 %v1380_v53  ;;  %v1426_v53 = vld [vmem:[#allocation5 + $0x20] ss:$8 sps:$4 sm:$0xff]  }
  0x4d   :  { %648 = vmatprep.subr.bf16.mxu0 %v1381_v54  ;;  %v1431_v54 = vld [vmem:[#allocation5 + $0x14] ss:$8 sps:$4 sm:$0xff]  }
  0x4e   :  { %682 = vmatpush2.bf16.msra.mxu1 %v1371_v51  ;;  %v1423_v51 = vld [vmem:[#allocation5 + $0x30] ss:$8 sps:$4 sm:$0xff]  }
  0x4f   :  { %683 = vmatprep.subr.bf16.mxu1 %v1379_v52  ;;  %v1428_v52 = vld [vmem:[#allocation5 + $0x24] ss:$8 sps:$4 sm:$0xff]  }
  0x50   :  { %649 = vmatpush2.bf16.msra.mxu0 %v1386_v57  ;;  %v1432_v57 = vld [vmem:[#allocation5] ss:$8 sps:$4 sm:$0xff]  }
  0x51   :  { %650 = vmatprep.subr.bf16.mxu0 %v1387_v58  ;;  %v1437_v58 = vld [vmem:[#allocation5 + $0xf4] ss:$8 sps:$4 sm:$0xff]  }
  0x52   :  { %684 = vmatpush2.bf16.msra.mxu1 %v1377_v55  ;;  %v1429_v55 = vld [vmem:[#allocation5 + $0x10] ss:$8 sps:$4 sm:$0xff]  }
  0x53   :  { %685 = vmatprep.subr.bf16.mxu1 %v1385_v56  ;;  %v1434_v56 = vld [vmem:[#allocation5 + $0x4] ss:$8 sps:$4 sm:$0xff]  }
  0x54   :  { %651 = vmatpush2.bf16.msra.mxu0 %v1392_v61  ;;  %v1438_v61 = vld [vmem:[#allocation5 + $0xe0] ss:$8 sps:$4 sm:$0xff]  }
  0x55   :  { %652 = vmatprep.subr.bf16.mxu0 %v1393_v63  ;;  %v1441_v63 = vld [vmem:[#allocation5 + $0xd0] ss:$8 sps:$4 sm:$0xff]  }
  0x56   :  { %686 = vmatpush2.bf16.msra.mxu1 %v1383_v59  ;;  %v1435_v59 = vld [vmem:[#allocation5 + $0xf0] ss:$8 sps:$4 sm:$0xff]  }
  0x57   :  { %687 = vmatprep.subr.bf16.mxu1 %v1391_v60  ;;  %v1440_v60 = vld [vmem:[#allocation5 + $0xe4] ss:$8 sps:$4 sm:$0xff]  }
  0x58   :  { %653 = vmatpush2.bf16.msra.mxu0 %v1398_v2  ;;  %v1449_v2 = vld [vmem:[#allocation5 + $0xb4] ss:$8 sps:$4 sm:$0xff]  }
  0x59   :  { %654 = vmatprep.subr.bf16.mxu0 %v1399_v3  ;;  %v1447_v3 = vld [vmem:[#allocation5 + $0xb0] ss:$8 sps:$4 sm:$0xff]  }
  0x5a   :  { %688 = vmatpush2.bf16.msra.mxu1 %v1389_v62  ;;  %v1443_v62 = vld [vmem:[#allocation5 + $0xd4] ss:$8 sps:$4 sm:$0xff]  }
  0x5b   :  { %689 = vmatprep.subr.bf16.mxu1 %v1397_v0  ;;  %v1446_v0 = vld [vmem:[#allocation5 + $0xc4] ss:$8 sps:$4 sm:$0xff]  }
  0x5c   :  { %655 = vmatpush2.bf16.msra.mxu0 %v1404_v6  ;;  %v1455_v6 = vld [vmem:[#allocation5 + $0x94] ss:$8 sps:$4 sm:$0xff]  }
  0x5d   :  { %914 = vmatprep.subr.bf16.mxu0 %v1413_v11  ;;  %v1460_v11 = vld [vmem:[%s1712_s7 + $0x38] sm:$0xff]  }
  0x5e   :  { %690 = vmatpush2.bf16.msra.mxu1 %v1395_v1  ;;  %v1444_v1 = vld [vmem:[#allocation5 + $0xc0] ss:$8 sps:$4 sm:$0xff]  }
  0x5f   :  { %691 = vmatprep.subr.bf16.mxu1 %v1403_v4  ;;  %v1452_v4 = vld [vmem:[#allocation5 + $0xa4] ss:$8 sps:$4 sm:$0xff]  }
  0x62   :  { %692 = vmatpush2.bf16.msra.mxu1 %v1401_v5  ;;  %v1450_v5 = vld [vmem:[#allocation5 + $0xa0] ss:$8 sps:$4 sm:$0xff]  }
  0x63   :  { %693 = vmatprep.subr.bf16.mxu1 %v1407_v7  ;;  %v1453_v7 = vld [vmem:[#allocation5 + $0x90] ss:$8 sps:$4 sm:$0xff]  }
  0x66   :  { %694 = vmatpush2.bf16.msra.mxu1 %v1405_v8  ;;  %v1458_v8 = vld [vmem:[#allocation5 + $0x84] ss:$8 sps:$4 sm:$0xff]  }
  0x67   :  { %695 = vmatprep.subr.bf16.mxu1 %v1410_v9  ;;  %v1456_v9 = vld [vmem:[#allocation5 + $0x80] ss:$8 sps:$4 sm:$0xff]  }
  0x6a   :  { %696 = vmatpush2.bf16.msra.mxu1 %v1408_v10  ;;  %v1459_v10 = vld [vmem:[%s1712_s7 + $0x78] sm:$0xff]  }
  0x6b   :  { %1275 = vmatprep.subr.bf16.mxu1 %v1459_v10 }
  0xe5   :  { %v172_v19 = vpop.f32.mrf.mxu1 }
  0xe6   :  { %v173_v20 = vadd.f32 %v172_v19, %v77_v17  ;;  %v1464_v17 = vld [vmem:[%s1712_s7 + $0x28] sm:$0xff]   ;;  %v1466_v19 = vld [vmem:[%s1712_s7 + $0x20] sm:$0xff]  }
  0xe7   :  { %v174_v22 = vpop.f32.mrf.mxu1 }
  0xe8   :  { %v175_v23 = vadd.f32 %v174_v22, %v81_v18  ;;  %v220_v25 = vmax.f32 %v173_v20, 0.0  ;;  %v1465_v18 = vld [vmem:[%s1712_s7 + $0x60] sm:$0xff]   ;;  %v1467_v20 = vld [vmem:[%s1712_s7 + $0x58] sm:$0xff]   ;;  %v1469_v22 = vld [vmem:[%s1712_s7 + $0x50] sm:$0xff]  }
  0xe9   :  { %v176_v26 = vpop.f32.mrf.mxu1 }
  0xea   :  { %v221_v28 = vmax.f32 %v175_v23, 0.0  ;;  %v224_v33 = vpack.c.bf16 %v220_v25, %v220_v25  ;;  %v1470_v23 = vld [vmem:[%s1712_s7 + $0x10] sm:$0xff]  }
  0xeb   :  { %v177_v29 = vpop.f32.mrf.mxu1 }
  0xec   :  { %v225_v30 = vpack.c.bf16 %v221_v28, %v221_v28  ;;  %v301_v29 = vrot.slane %v292_v24, %v1637_v16 }
  0xed   :  { %v213_v34 = vpop.f32.mrf.mxu1 }
  0xee   :  { %v214_v36 = vadd.f32 %v213_v34, %v85_v27  ;;  %656 = vmatprep.mubr.bf16.mxu0 %v225_v30  ;;  %v297_v27 = vrot.slane %v292_v24, %v1632_v14 }
  0xef   :  { %v215_v37 = vpop.f32.mrf.mxu1  ;;  %657 = vmatmul.mubr.bf16.vlgmr.msra.gmra.mxu0 %v224_v33 }
  0xf0   :  { %v216_v38 = vadd.f32 %v215_v37, %v89_v31  ;;  %915 = vmatpush1.bf16.msra.mxu0 %v1411_v32  ;;  %v222_v40 = vmax.f32 %v214_v36, 0.0 }
  0xf1   :  { %v217_v41 = vpop.f32.mrf.mxu1  ;;  %916 = vmatprep.subr.bf16.mxu0 %v1416_v35 }
  0xf2   :  { %v223_v43 = vmax.f32 %v216_v38, 0.0  ;;  %v226_v47 = vpack.c.bf16 %v222_v40, %v222_v40 }
  0xf3   :  { %v218_v44 = vpop.f32.mrf.mxu1 }
  0xf4   :  { %v227_v45 = vpack.c.bf16 %v223_v43, %v223_v43  ;;  %917 = vmatpush1.bf16.msra.mxu0 %v1414_v39  ;;  %v1471_v43 = vld [vmem:[%s1712_s7 + $0x48] sm:$0xff]  }
  0xf5   :  { %918 = vmatprep.subr.bf16.mxu0 %v1419_v42  ;;  %v1472_v44 = vld [vmem:[%s1712_s7 + $0x8] sm:$0xff]  }
  0xf6   :  { %697 = vmatprep.mubr.bf16.mxu1 %v227_v45  ;;  %v1473_v45 = vld [vmem:[%s1712_s7 + $0x40] sm:$0xff]  }
  0xf7   :  { %698 = vmatmul.mubr.bf16.vlgmr.msra.gmra.mxu1 %v226_v47  ;;  %v742_v47 = vld [vmem:[%s1711_s6] sm:$0x3]  ;;  %s1546_s6 = smov [#allocation7]  }
  0xf8   :  { %919 = vmatpush1.bf16.msra.mxu0 %v1417_v46  ;;  %1276 = vmatpush3.bf16.msra.mxu1 %v1460_v11  ;;  %v1474_v46 = vld [vmem:[%s1712_s7] sm:$0xff]   ;;  %s1142_s24 = sshll.u32 %s1546_s6, 4  ;;  %s1143_s24 = int_to_ptr.vmem [resolvable:$true] %s1142_s24 }
  0xf9   :  { %920 = vmatprep.subr.bf16.mxu0 %v1422_v48  ;;  %1277 = vmatprep.subr.bf16.mxu1 %v1461_v12  ;;  %v747_v48 = vrot.slane %v742_v47, %v1632_v14  ;;  %s1515_s25 = scalar_lea.vmem %s1143_s24, 128  ;;  %p1520_p11 = scmp.lt.s32.totalorder %s1143_s24, %s1143_s24 }
  0xfa   :  { %p1516_p10 = scmp.ne.s32.totalorder %s1143_s24, %s1515_s25  ;;  %p1521_p12 = scmp.lt.s32.totalorder %s1515_s25, %s1515_s25 }
  0xfc   :  { %921 = vmatpush1.bf16.msra.mxu0 %v1420_v49  ;;  %1278 = vmatpush3.bf16.msra.mxu1 %v1462_v13  ;;  %v751_v49 = vrot.slane %v742_v47, %v1637_v16  ;;  %p1522_p13 = por %p1521_p12, %p1520_p11 }
  0xfd   :  { %922 = vmatprep.subr.bf16.mxu0 %v1425_v50  ;;  %1279 = vmatprep.subr.bf16.mxu1 %v1463_v15 }
  0xfe   :  { %p1523_p0 = pnand %p1522_p13, %p1516_p10 }
 0x100   :  { %923 = vmatpush1.bf16.msra.mxu0 %v1423_v51  ;;  %1280 = vmatpush3.bf16.msra.mxu1 %v1464_v17 }
 0x101   :  { %924 = vmatprep.subr.bf16.mxu0 %v1428_v52  ;;  %1281 = vmatprep.subr.bf16.mxu1 %v1465_v18 }
 0x104   :  { %925 = vmatpush1.bf16.msra.mxu0 %v1426_v53  ;;  %1282 = vmatpush3.bf16.msra.mxu1 %v1466_v19 }
 0x105   :  { %926 = vmatprep.subr.bf16.mxu0 %v1431_v54  ;;  %1283 = vmatprep.subr.bf16.mxu1 %v1467_v20 }
 0x108   :  { %927 = vmatpush1.bf16.msra.mxu0 %v1429_v55  ;;  %1284 = vmatpush3.bf16.msra.mxu1 %v1468_v21 }
 0x109   :  { %928 = vmatprep.subr.bf16.mxu0 %v1434_v56  ;;  %1285 = vmatprep.subr.bf16.mxu1 %v1469_v22 }
 0x10c   :  { %929 = vmatpush1.bf16.msra.mxu0 %v1432_v57  ;;  %1286 = vmatpush3.bf16.msra.mxu1 %v1470_v23 }
 0x10d   :  { %930 = vmatprep.subr.bf16.mxu0 %v1437_v58  ;;  %1287 = vmatprep.subr.bf16.mxu1 %v1471_v43 }
 0x110   :  { %931 = vmatpush2.bf16.msra.mxu0 %v1435_v59  ;;  %1288 = vmatpush3.bf16.msra.mxu1 %v1472_v44 }
 0x111   :  { %932 = vmatprep.subr.bf16.mxu0 %v1440_v60  ;;  %1289 = vmatprep.subr.bf16.mxu1 %v1473_v45 }
 0x114   :  { %933 = vmatpush2.bf16.msra.mxu0 %v1438_v61  ;;  %1290 = vmatpush3.bf16.msra.mxu1 %v1474_v46  ;;  %v1258_v61 = vld [vmem:[%s1713_s8] ss:$0 sm:$0xff] }
 0x115   :  { %934 = vmatprep.subr.bf16.mxu0 %v1443_v62 }
 0x118   :  { %935 = vmatpush2.bf16.msra.mxu0 %v1441_v63 }
 0x119   :  { %936 = vmatprep.subr.bf16.mxu0 %v1446_v0 }
 0x11c   :  { %937 = vmatpush2.bf16.msra.mxu0 %v1444_v1 }
 0x11d   :  { %938 = vmatprep.subr.bf16.mxu0 %v1449_v2 }
 0x120   :  { %939 = vmatpush2.bf16.msra.mxu0 %v1447_v3 }
 0x121   :  { %940 = vmatprep.subr.bf16.mxu0 %v1452_v4 }
 0x124   :  { %941 = vmatpush2.bf16.msra.mxu0 %v1450_v5 }
 0x125   :  { %942 = vmatprep.subr.bf16.mxu0 %v1455_v6 }
 0x128   :  { %943 = vmatpush2.bf16.msra.mxu0 %v1453_v7 }
 0x129   :  { %944 = vmatprep.subr.bf16.mxu0 %v1458_v8 }
 0x12c   :  { %945 = vmatpush2.bf16.msra.mxu0 %v1456_v9 }
 0x1af   :  { %v658_v25 = vpop.f32.mrf.mxu0 }
 0x1b0   :  { %v659_v31 = vadd.f32 %v658_v25, %v297_v27 }
 0x1b1   :  { %v660_v26 = vpop.f32.mrf.mxu0 }
 0x1b2   :  { %v661_v33 = vadd.f32 %v660_v26, %v301_v29 }
 0x1b3   :  { %v662_v28 = vpop.f32.mrf.mxu0 }
 0x1b5   :  { %v663_v30 = vpop.f32.mrf.mxu0 }
 0x1b7   :  { %v699_v32 = vpop.f32.mrf.mxu1 }
 0x1b8   :  { %v700_v34 = vadd.f32 %v699_v32, %v659_v31 }
 0x1b9   :  { %v701_v35 = vpop.f32.mrf.mxu1 }
 0x1ba   :  { %v702_v36 = vadd.f32 %v701_v35, %v661_v33  ;;  %v706_v37 = vmax.f32 %v700_v34, 0.0 }
 0x1bb   :  { %v703_v38 = vpop.f32.mrf.mxu1 }
 0x1bc   :  { %v707_v39 = vmax.f32 %v702_v36, 0.0  ;;  %v708_v42 = vpack.c.bf16 %v706_v37, %v706_v37 }
 0x1bd   :  { %v704_v40 = vpop.f32.mrf.mxu1 }
 0x1be   :  { %v709_v41 = vpack.c.bf16 %v707_v39, %v707_v39 }
 0x1c0   :  { %946 = vmatprep.mubr.bf16.mxu0 %v709_v41 }
 0x1c1   :  { %947 = vmatmul.mubr.bf16.vlgmr.msra.gmra.mxu0 %v708_v42 }
 0x281   :  { %v948_v50 = vpop.f32.mrf.mxu0 }
 0x282   :  { %v949_v51 = vadd.f32 %v948_v50, %v747_v48 }
 0x283   :  { %v950_v52 = vpop.f32.mrf.mxu0 }
 0x284   :  { %v951_v53 = vadd.f32 %v950_v52, %v751_v49  ;;  %v955_v54 = vmax.f32 %v949_v51, 0.0 }
 0x285   :  { %v952_v55 = vpop.f32.mrf.mxu0 }
 0x286   :  { %v956_v56 = vmax.f32 %v951_v53, 0.0  ;;  %v957_v59 = vpack.c.bf16 %v955_v54, %v955_v54 }
 0x287   :  { %v953_v57 = vpop.f32.mrf.mxu0 }
 0x288   :  { %v958_v58 = vpack.c.bf16 %v956_v56, %v956_v56 }
 0x28a   :  { %1126 = vmatprep.mubr.bf16.mxu1 %v958_v58 }
 0x28b   :  { %1127 = vmatmul.mubr.bf16.vlgmr.msra.gmra.mxu1 %v957_v59 }
 0x34b   :  { %v1291_v60 = vpop.f32.mrf.mxu1 }
 0x34d   :  { %v1292_v14 = vpop.f32.mrf.mxu1 }
 0x34e   :  { %v1293_v16 = vadd.f32 %v1292_v14, %v1291_v60 }
 0x34f   :  { %v1294_v62 = vpop.f32.mrf.mxu1 }
 0x350   :  { %v1129_v63 = vadd.f32 %v1293_v16, %v1258_v61 }
 0x351   :  { %v1295_v0 = vpop.f32.mrf.mxu1 }
 0x352   :  { %1135 = vst.msk [vmem:[#allocation7] sm:$0xff] %vm1134_vm1, %v1129_v63 }
 0x353   :  { %1526 = shalt.err (!%p1523_p0)
}
 0x354   :  { %1145 = dma.vmem_to_hbm [thread:$0]  %s1143_s24, 128, %s1714_s9, [#allocation4]  }
 0x355   :  { %1539 = dma.done.wait [#allocation4], 128  }
 0x356   :  { %1540 = vsyncadd [#allocation4], 4294967168 }
 0x357   :  { %1149 = vsyncpa [#allocation3], 1 }
 0x358   :  { %1150 = vsyncpa [#allocation6], 1 }
 0x359   :  { %1151 = vsyncpa [#allocation4], 1 }

</bundles_post_ra>
